<compile_context>
chip_gen: v7x
topology: tpu7x:2x2x1
jax: 0.10.0
libtpu: 0.0.40
codegen_flags: <defaults>
</compile_context>

<pallas_src>
import functools

import jax
import jax.numpy as jnp
from jax.experimental import pallas as pl
from jax.experimental.pallas import tpu as pltpu


def _block_mask_flat(seeds, block_size, W):
    """block_mask (1 = keep, 0 = drop) for one (Gt, H*W) tile of seeds."""
    Gt, HW = seeds.shape
    dt = seeds.dtype

    def shift_right(a, s):
        # Shift the flattened row-major (H*W) axis right by s, zero fill.
        pad = jnp.zeros((Gt, s), dtype=dt)
        return jnp.concatenate([pad, a[:, : HW - s]], axis=1)

    # Dilate along W: shift by dx moves column j -> j+dx; spill across a row
    # boundary only picks up columns >= W-(bs-1), which are zero by padding.
    acc_w = seeds
    for dx in range(1, block_size):
        acc_w = acc_w + shift_right(seeds, dx)
    # Dilate along H: shift by dy*W moves row i -> i+dy (same zero argument).
    counts = acc_w
    for dy in range(1, block_size):
        counts = counts + shift_right(acc_w, dy * W)
    return jnp.where(counts > 0.5, 0.0, 1.0).astype(jnp.float32)


def _count_kernel(seeds_ref, psum_ref, *, block_size, W):
    bm = _block_mask_flat(seeds_ref[...], block_size, W)
    psum_ref[...] = jnp.sum(bm, axis=1, keepdims=True)  # (Gt, 1) per-image ones


def _apply_kernel(scale_ref, seeds_ref, x_ref, o_ref, *, block_size, W):
    bm = _block_mask_flat(seeds_ref[...], block_size, W)
    x = x_ref[...]
    # Keep the big elementwise multiply in x's dtype (bf16 VALU on v6e/v7x);
    # mask is exactly 0/1 so casting (mask * scale) once is exact for keepers.
    scaled_mask = (bm * scale_ref[0]).astype(x.dtype)
    o_ref[...] = (x * scaled_mask).astype(o_ref.dtype)


def _choose_block_g(G, HW, itemsize, budget_bytes=2 * 1024 * 1024):
    """Largest Gt that divides G, satisfies the (8,128) rule, fits the budget."""
    max_gt = max(1, budget_bytes // max(1, HW * itemsize))
    best = None
    for gt in range(1, G + 1):
        if G % gt != 0:
            continue
        if gt != G and gt % 8 != 0:  # sublane rule unless full extent
            continue
        if gt <= max_gt:
            best = gt
    return best if best is not None else G


def dropblock(x, gamma, key, *, block_size, training=True):
    """DropBlock forward. x: (B, C, H, W); gamma: drop probability."""
    if not training:
        return x
    B, C, H, W = x.shape
    bs = block_size
    Hm, Wm = H - (bs - 1), W - (bs - 1)
    G, HW = B * C, H * W

    # Bernoulli seeds on the valid region, zero-padded to the full (H, W) map.
    bern = jax.random.bernoulli(key, gamma, (B, C, Hm, Wm)).astype(jnp.float32)
    seeds = jnp.pad(bern, ((0, 0), (0, 0), (0, bs - 1), (0, bs - 1)))
    seeds = seeds.reshape(G, HW)          # lane-dense layout (last dim = H*W)
    x_flat = x.reshape(G, HW)

    gt = _choose_block_g(G, HW, max(x.dtype.itemsize, 4))
    grid = (G // gt,)
    cparams = pltpu.CompilerParams(
        dimension_semantics=("parallel",),
        vmem_limit_bytes=32 * 1024 * 1024,
    )

    # ---- pass 1: per-image count of surviving (ones) positions ----
    psum = pl.pallas_call(
        functools.partial(_count_kernel, block_size=bs, W=W),
        grid=grid,
        in_specs=[pl.BlockSpec((gt, HW), lambda g: (g, 0))],
        out_specs=pl.BlockSpec((gt, 1), lambda g: (g, 0)),
        out_shape=jax.ShapeDtypeStruct((G, 1), jnp.float32),
        compiler_params=cparams,
    )(seeds)

    count_m = jnp.float32(B * C * H * W)
    count_ones = jnp.sum(psum)
    # No epsilon guard: matches torch (count_ones == 0 -> inf/NaN).
    scale = (count_m / count_ones).reshape((1,)).astype(jnp.float32)

    # ---- pass 2: apply block_mask * x * scale ----
    out_flat = pl.pallas_call(
        functools.partial(_apply_kernel, block_size=bs, W=W),
        grid=grid,
        in_specs=[
            pl.BlockSpec(memory_space=pltpu.MemorySpace.SMEM),  # scale scalar
            pl.BlockSpec((gt, HW), lambda g: (g, 0)),           # seeds
            pl.BlockSpec((gt, HW), lambda g: (g, 0)),           # x
        ],
        out_specs=pl.BlockSpec((gt, HW), lambda g: (g, 0)),
        out_shape=jax.ShapeDtypeStruct((G, HW), x.dtype),
        compiler_params=cparams,
    )(scale, seeds, x_flat)

    return out_flat.reshape(B, C, H, W)


def _dropblock_reference(x, gamma, key, block_size):
    """Pure-JAX reference with the identical RNG draw (self-check only)."""
    B, C, H, W = x.shape
    bs = block_size
    Hm, Wm = H - (bs - 1), W - (bs - 1)
    bern = jax.random.bernoulli(key, gamma, (B, C, Hm, Wm)).astype(jnp.float32)
    pad = jnp.pad(bern, ((0, 0), (0, 0), (0, bs - 1), (0, bs - 1)))
    counts = jnp.zeros_like(pad)
    for dy in range(bs):
        for dx in range(bs):
            counts = counts + jnp.roll(jnp.roll(pad, dy, axis=2), dx, axis=3)
    bm = jnp.where(counts > 0.5, 0.0, 1.0)
    scale = jnp.float32(B * C * H * W) / jnp.sum(bm)
    return (bm * x * scale).astype(x.dtype)


if __name__ == "__main__":
    key = jax.random.PRNGKey(0)
    kx, kmask = jax.random.split(key)

    B, C, H, W = 2, 4, 16, 16
    block_size = 3
    gamma = 0.1

    x = jax.random.normal(kx, (B, C, H, W), dtype=jnp.float32)

    out = dropblock(x, gamma, kmask, block_size=block_size, training=True)
    out = jax.block_until_ready(out)

    assert out.shape == x.shape and out.dtype == x.dtype
    assert bool(jnp.isfinite(out).all())

    ref = _dropblock_reference(x, gamma, kmask, block_size)
    err = float(jnp.max(jnp.abs(out - ref)))
    assert err < 1e-4, f"mismatch vs reference: {err}"

    # eval mode is a pass-through
    out_eval = dropblock(x, gamma, kmask, block_size=block_size, training=False)
    assert bool(jnp.all(out_eval == x))

    print("KERNEL_OK")
</pallas_src>

<mosaic_0001>
module attributes {stable_mosaic.version = 11 : i64} {
  func.func @_count_kernel(%arg0: i32, %arg1: memref<8x256xf32, #tpu.memory_space<vmem>>, %arg2: memref<8x1xf32, #tpu.memory_space<vmem>>) attributes {dimension_semantics = [#tpu.dimension_semantics<parallel>], iteration_bounds = array<i64: 1>, scalar_prefetch = 0 : i64, scratch_operands = 0 : i64, tpu.core_type = #tpu.core_type<tc>, window_params = [{transform_indices = @transform_0, window_bounds = array<i64: 8, 256>}, {transform_indices = @transform_1, window_bounds = array<i64: 8, 1>}]} {
    %c0 = arith.constant 0 : index
    %c0_0 = arith.constant 0 : index
    %0 = vector.load %arg1[%c0, %c0_0] : memref<8x256xf32, #tpu.memory_space<vmem>>, vector<8x256xf32>
    %cst = arith.constant 0.000000e+00 : f32
    %1 = vector.broadcast %cst : f32 to vector<8x1xf32>
    %2 = vector.extract_strided_slice %0 {offsets = [0, 0], sizes = [8, 255], strides = [1, 1]} : vector<8x256xf32> to vector<8x255xf32>
    %3 = tpu.concatenate %1, %2 in 1 : vector<8x1xf32>, vector<8x255xf32> -> vector<8x256xf32>
    %4 = arith.addf %0, %3 : vector<8x256xf32>
    %cst_1 = arith.constant 0.000000e+00 : f32
    %5 = vector.broadcast %cst_1 : f32 to vector<8x2xf32>
    %6 = vector.extract_strided_slice %0 {offsets = [0, 0], sizes = [8, 254], strides = [1, 1]} : vector<8x256xf32> to vector<8x254xf32>
    %7 = tpu.concatenate %5, %6 in 1 : vector<8x2xf32>, vector<8x254xf32> -> vector<8x256xf32>
    %8 = arith.addf %4, %7 : vector<8x256xf32>
    %cst_2 = arith.constant 0.000000e+00 : f32
    %9 = vector.broadcast %cst_2 : f32 to vector<8x16xf32>
    %10 = vector.extract_strided_slice %8 {offsets = [0, 0], sizes = [8, 240], strides = [1, 1]} : vector<8x256xf32> to vector<8x240xf32>
    %11 = tpu.concatenate %9, %10 in 1 : vector<8x16xf32>, vector<8x240xf32> -> vector<8x256xf32>
    %12 = arith.addf %8, %11 : vector<8x256xf32>
    %cst_3 = arith.constant 0.000000e+00 : f32
    %13 = vector.broadcast %cst_3 : f32 to vector<8x32xf32>
    %14 = vector.extract_strided_slice %8 {offsets = [0, 0], sizes = [8, 224], strides = [1, 1]} : vector<8x256xf32> to vector<8x224xf32>
    %15 = tpu.concatenate %13, %14 in 1 : vector<8x32xf32>, vector<8x224xf32> -> vector<8x256xf32>
    %16 = arith.addf %12, %15 : vector<8x256xf32>
    %cst_4 = arith.constant 5.000000e-01 : f32
    %17 = vector.broadcast %cst_4 : f32 to vector<8x256xf32>
    %18 = arith.cmpf ogt, %16, %17 : vector<8x256xf32>
    %cst_5 = arith.constant 0.000000e+00 : f32
    %cst_6 = arith.constant 1.000000e+00 : f32
    %19 = vector.broadcast %cst_5 : f32 to vector<8x256xf32>
    %20 = vector.broadcast %cst_6 : f32 to vector<8x256xf32>
    %21 = arith.select %18, %19, %20 : vector<8x256xi1>, vector<8x256xf32>
    %cst_7 = arith.constant dense<0.000000e+00> : vector<8xf32>
    %22 = vector.multi_reduction <add>, %21, %cst_7 [1] : vector<8x256xf32> to vector<8xf32>
    %23 = vector.shape_cast %22 : vector<8xf32> to vector<8x1xf32>
    %c0_8 = arith.constant 0 : index
    %c0_9 = arith.constant 0 : index
    %24 = vector.load %arg2[%c0_8, %c0_9] : memref<8x1xf32, #tpu.memory_space<vmem>>, vector<8x1xf32>
    tpu.vector_store %arg2[%c0_8, %c0_9], %23 {strides = array<i32>} : memref<8x1xf32, #tpu.memory_space<vmem>>, vector<8x1xf32>,
    return
  }
  func.func @transform_0(%arg0: i32) -> (i32, i32) {
    %c0_i32 = arith.constant 0 : i32
    %c0_i32_0 = arith.constant 0 : i32
    return %arg0, %c0_i32 : i32, i32
  }
  func.func @transform_1(%arg0: i32) -> (i32, i32) {
    %c0_i32 = arith.constant 0 : i32
    %c0_i32_0 = arith.constant 0 : i32
    return %arg0, %c0_i32 : i32, i32
  }
}

</mosaic_0001>

<bundles_post_ra>
// kernel: tpu_custom_call.1
= control target key start
LH: loop header
LB: loop body
LE: loop exit
PB: predicated region body
PF: predicated region fallthrough
CT: control target
= control target key end

     0   :  { %6 = vsyncpa [#allocation3], 0  ;;  %s113_s6 = smov [#allocation2]   ;;  %s147_s0 = inlined_call_operand.hbm [shape: f32[8,256], index: 0, kind: input, shape index: {}]   ;;  %s148_s1 = inlined_call_operand.vmem [shape: f32[8,1], index: 1, kind: output, shape index: {}]  }
   0x1   :  { %s13_s7 = sshll.u32 %s113_s6, 4  ;;  %s89_s10 = scalar_lea.hbm %s147_s0, 256  ;;  %s14_s7 = int_to_ptr.vmem [resolvable:$true] %s13_s7 }
   0x2   :  { %p90_p0 = scmp.ne.s32.totalorder %s147_s0, %s89_s10  ;;  %p93_p1 = scmp.lt.u32.totalorder %s89_s10, %s147_s0 }
   0x4   :  { %p95_p2 = pnand %p93_p1, %p90_p0 }
   0x6   :  { %98 = shalt.err (!%p95_p2)
}
   0x7   :  { %s99_s15 = scalar_lea.vmem %s14_s7, 256  ;;  %p104_p4 = scmp.lt.s32.totalorder %s14_s7, %s14_s7 }
   0x8   :  { %p100_p3 = scmp.ne.s32.totalorder %s14_s7, %s99_s15  ;;  %p105_p5 = scmp.lt.s32.totalorder %s99_s15, %s99_s15 }
   0xa   :  { %p106_p6 = por %p105_p5, %p104_p4 }
   0xc   :  { %p107_p7 = pnand %p106_p6, %p100_p3 }
   0xe   :  { %110 = shalt.err (!%p107_p7)
}
   0xf   :  { %16 = dma.hbm_to_vmem [thread:$0]  %s147_s0, 256, %s14_s7, [#allocation3]  }
  0x10   :  { %111 = dma.done.wait [#allocation3], 256  }
  0x11   :  { %112 = vsyncadd [#allocation3], 4294967040  ;;  %v20_v0 = vld [vmem:[#allocation2] sm:$0xff]  ;;  %s114_s18 = smov 2   ;;  %s115_s19 = smov 1   ;;  %v21_v1 = vld [vmem:[#allocation2 + $0x8] sm:$0xff] }
  0x12   :  { %35 = vrot.lane.b32.xlu1 %v20_v0, %s114_s18  ;;  %24 = vrot.lane.b32.xlu0 %v20_v0, %s115_s19  ;;  %vm39_vm0 = vcmask 15360   ;;  %vm28_vm1 = vcmask 7168   ;;  %s116_s0 = smov 16   ;;  %s117_s20 = smov 32   ;;  %vm52_vm2 = vcmask 130048   ;;  %vm63_vm3 = vcmask 261120  }
  0x13   :  { %v118_v26 = vmov 1.0  }
  0x16   :  { %37 = vrot.lane.b32.xlu1 %v21_v1, %s114_s18  ;;  %26 = vrot.lane.b32.xlu0 %v21_v1, %s115_s19 }
  0x84   :  { %v36_v2 = vpop.permute.xlu1 %35  ;;  %v25_v3 = vpop.permute.xlu0 %24 }
  0x85   :  { %v43_v4 = vsel %vm39_vm0, 0.0, %v36_v2  ;;  %v32_v5 = vsel %vm28_vm1, 0.0, %v25_v3 }
  0x86   :  { %v33_v6 = vadd.f32 %v32_v5, %v20_v0 }
  0x88   :  { %v38_v7 = vpop.permute.xlu1 %37  ;;  %v27_v8 = vpop.permute.xlu0 %26  ;;  %v44_v9 = vadd.f32 %v43_v4, %v33_v6 }
  0x89   :  { %v29_v10 = vsel %vm28_vm1, %v25_v3, %v27_v8  ;;  %v40_v12 = vsel %vm39_vm0, %v36_v2, %v38_v7 }
  0x8a   :  { %v34_v11 = vadd.f32 %v29_v10, %v21_v1  ;;  %48 = vrot.lane.b32.xlu0 %v44_v9, %s116_s0 }
  0x8c   :  { %v45_v13 = vadd.f32 %v40_v12, %v34_v11 }
  0x8e   :  { %59 = vrot.lane.b32.xlu0 %v44_v9, %s117_s20  ;;  %50 = vrot.lane.b32.xlu1 %v45_v13, %s116_s0 }
  0x92   :  { %61 = vrot.lane.b32.xlu1 %v45_v13, %s117_s20 }
  0xfc   :  { %v49_v14 = vpop.permute.xlu0 %48 }
  0xfd   :  { %v56_v15 = vsel %vm52_vm2, 0.0, %v49_v14 }
  0xfe   :  { %v57_v16 = vadd.f32 %v56_v15, %v44_v9 }
 0x100   :  { %v51_v17 = vpop.permute.xlu1 %50  ;;  %v60_v18 = vpop.permute.xlu0 %59 }
 0x101   :  { %v53_v19 = vsel %vm52_vm2, %v49_v14, %v51_v17  ;;  %v67_v20 = vsel %vm63_vm3, 0.0, %v60_v18 }
 0x102   :  { %v68_v21 = vadd.f32 %v67_v20, %v57_v16  ;;  %v58_v22 = vadd.f32 %v53_v19, %v45_v13 }
 0x104   :  { %v62_v23 = vpop.permute.xlu1 %61  ;;  %vm70_vm4 = vcmp.gt.f32.partialorder %v68_v21, 0.5 }
 0x105   :  { %v64_v24 = vsel %vm63_vm3, %v60_v18, %v62_v23  ;;  %v72_v27 = vsel %vm70_vm4, 0.0, %v118_v26 }
 0x106   :  { %v69_v25 = vadd.f32 %v64_v24, %v58_v22 }
 0x108   :  { %vm71_vm5 = vcmp.gt.f32.partialorder %v69_v25, 0.5 }
 0x109   :  { %v73_v28 = vsel %vm71_vm5, 0.0, %v118_v26 }
 0x10a   :  { %v74_v29 = vadd.f32 %v73_v28, %v72_v27 }
 0x10c   :  { %75 = vadd.xlane.f32.xlu0 %v74_v29 }
 0x199   :  { %v76_v30 = vpop.xlane.xlu0 %75 }
 0x19a   :  { %77 = vst.msk [vmem:[%s148_s1] sm:$0xff] %vm28_vm1, %v76_v30 }
 0x19b   :  { %82 = vsyncpa [#allocation3], 1 }

</bundles_post_ra>
